<compile_context>
chip_gen: v7x
topology: tpu7x:2x2x1
jax: 0.10.0
libtpu: 0.0.40
codegen_flags: <defaults>
</compile_context>

<pallas_src>
import jax
import jax.numpy as jnp
from jax.experimental import pallas as pl
from jax.experimental.pallas import tpu as pltpu


def lstm_seq_kernel(x_ref, h0_ref, c0_ref, w_ref, b_ref,
                    hseq_ref, h_last_ref, c_last_ref,
                    h_sc, c_sc):
    """One grid step == one LSTM time step.  h_sc/c_sc carry state across steps."""
    R = h0_ref.shape[-1]
    t = pl.program_id(0)

    # Initialize the recurrent state (f32) on the first time step.
    @pl.when(t == 0)
    def _():
        h_sc[...] = h0_ref[...].astype(jnp.float32)
        c_sc[...] = c0_ref[...].astype(jnp.float32)

    x = x_ref[0]                       # (B, E), activation dtype (bf16)
    h_prev = h_sc[...]                 # (B, R), f32
    c_prev = c_sc[...]                 # (B, R), f32

    # Fused i2h + h2h: one MXU pass over K = E + R, f32 accumulation.
    xh = jnp.concatenate(
        [x.astype(w_ref.dtype), h_prev.astype(w_ref.dtype)], axis=-1)  # (B, E+R)
    sums = jnp.dot(xh, w_ref[...], preferred_element_type=jnp.float32)
    sums = sums + b_ref[...]           # (1, 5R) broadcasts over batch

    # Gates: one sigmoid over the contiguous (B, 3R) chunk, then lane-aligned splits.
    sig = jax.nn.sigmoid(sums[:, :3 * R])
    in_gate = sig[:, 0 * R:1 * R]
    forget_gate = sig[:, 1 * R:2 * R]
    out_gate = sig[:, 2 * R:3 * R]
    in_transform = jnp.maximum(sums[:, 3 * R:4 * R], sums[:, 4 * R:5 * R])

    next_c = forget_gate * c_prev + in_gate * in_transform
    next_h = out_gate * jnp.tanh(next_c)

    # Carry state (f32) to the next grid step.
    h_sc[...] = next_h
    c_sc[...] = next_c

    # Per-step output + final state (final-state blocks are resident across the
    # time axis and written back to HBM only once, after the last step).
    hseq_ref[0] = next_h.astype(hseq_ref.dtype)
    h_last_ref[...] = next_h.astype(h_last_ref.dtype)
    c_last_ref[...] = next_c.astype(c_last_ref.dtype)


def lstm_core_sequence(xs, state, w_fused, b, *, out_dtype=jnp.float32):
    """Run LSTMCore for T steps in a single pallas_call.

    xs:      (T, B, E)        activations (bf16 or f32)
    state:   (h, c), each (1, B, R)  (PyTorch-style layer-major state)
    w_fused: (E + R, 5R)      [Wx; Wh] (transposed vs. PyTorch (out, in))
    b:       (5R,)            b_i2h + b_h2h
    returns  (h_seq (T,B,R) f32, h_T (B,R) f32, c_T (B,R) f32)
    """
    T, B, E = xs.shape
    h0 = state[0][-1].astype(jnp.float32)          # (B, R)
    c0 = state[1][-1].astype(jnp.float32)          # (B, R)
    R = h0.shape[-1]
    b2d = b.reshape(1, 5 * R).astype(jnp.float32)

    hseq, h_last, c_last = pl.pallas_call(
        lstm_seq_kernel,
        out_shape=(
            jax.ShapeDtypeStruct((T, B, R), out_dtype),
            jax.ShapeDtypeStruct((B, R), jnp.float32),
            jax.ShapeDtypeStruct((B, R), jnp.float32),
        ),
        grid=(T,),
        in_specs=[
            pl.BlockSpec((1, B, E), lambda t: (t, 0, 0)),        # per-step x
            pl.BlockSpec((B, R), lambda t: (0, 0)),              # h0 (resident)
            pl.BlockSpec((B, R), lambda t: (0, 0)),              # c0 (resident)
            pl.BlockSpec((E + R, 5 * R), lambda t: (0, 0)),      # fused W (resident)
            pl.BlockSpec((1, 5 * R), lambda t: (0, 0)),          # bias (resident)
        ],
        out_specs=(
            pl.BlockSpec((1, B, R), lambda t: (t, 0, 0)),        # h per step
            pl.BlockSpec((B, R), lambda t: (0, 0)),              # final h
            pl.BlockSpec((B, R), lambda t: (0, 0)),              # final c
        ),
        scratch_shapes=[
            pltpu.VMEM((B, R), jnp.float32),                     # h carry
            pltpu.VMEM((B, R), jnp.float32),                     # c carry
        ],
        # Time axis is a true recurrence -> "arbitrary".
        # TODO(synk): on v7x, large-batch workloads should add a leading
        # "parallel" batch grid axis so both TensorCores are used.
        compiler_params=pltpu.CompilerParams(
            dimension_semantics=("arbitrary",),
        ),
    )(xs, h0, c0, w_fused, b2d)
    return hseq, h_last, c_last


def lstm_core_forward(xt, state, wx, wh, b):
    """Pallas equivalent of LSTMCore.forward for a single step (T == 1).

    Eval-mode dropout is the identity, so output == next_h.
    """
    # TODO(synk): nn.Dropout with drop_prob_lm in training mode not applied.
    w_fused = jnp.concatenate([wx, wh], axis=0)
    hseq, h_last, c_last = lstm_core_sequence(xt[None], state, w_fused, b)
    output = hseq[0]
    return output, (h_last[None, ...], c_last[None, ...])


def _reference_sequence(xs, state, wx, wh, b):
    """Pure-JAX reference matching the PyTorch semantics + the kernel's
    quantization choices (bf16 operands into the matmul, f32 state)."""
    h = state[0][-1].astype(jnp.float32)
    c = state[1][-1].astype(jnp.float32)
    R = h.shape[-1]
    w = jnp.concatenate([wx, wh], axis=0).astype(jnp.float32)
    outs = []
    for t in range(xs.shape[0]):
        xh = jnp.concatenate([xs[t], h.astype(xs.dtype)], axis=-1).astype(jnp.float32)
        sums = jnp.dot(xh, w, precision=jax.lax.Precision.HIGHEST) + b
        sig = jax.nn.sigmoid(sums[:, :3 * R])
        in_gate, forget_gate, out_gate = (
            sig[:, :R], sig[:, R:2 * R], sig[:, 2 * R:3 * R])
        in_transform = jnp.maximum(sums[:, 3 * R:4 * R], sums[:, 4 * R:5 * R])
        c = forget_gate * c + in_gate * in_transform
        h = out_gate * jnp.tanh(c)
        outs.append(h)
    return jnp.stack(outs), h, c


if __name__ == "__main__":
    # Small, lane-friendly shapes implied by the module:
    #   opt.embedding_size = 128, opt.rnn_size = 128, batch = 8, seq = 8
    T, B, E, R = 8, 8, 128, 128

    key = jax.random.PRNGKey(0)
    k_x, k_h, k_c, k_wx, k_wh, k_bx, k_bh = jax.random.split(key, 7)

    xs = jax.random.normal(k_x, (T, B, E), jnp.float32).astype(jnp.bfloat16)
    h0 = jax.random.normal(k_h, (1, B, R), jnp.float32)
    c0 = jax.random.normal(k_c, (1, B, R), jnp.float32)

    # Deterministic parameter init mimicking nn.Linear's U(-1/sqrt(fan_in), ..),
    # weights stored transposed vs. PyTorch and quantized to bf16.
    bound_x = 1.0 / jnp.sqrt(E)
    bound_h = 1.0 / jnp.sqrt(R)
    wx = jax.random.uniform(k_wx, (E, 5 * R), jnp.float32,
                            -bound_x, bound_x).astype(jnp.bfloat16)
    wh = jax.random.uniform(k_wh, (R, 5 * R), jnp.float32,
                            -bound_h, bound_h).astype(jnp.bfloat16)
    b_i2h = jax.random.uniform(k_bx, (5 * R,), jnp.float32, -bound_x, bound_x)
    b_h2h = jax.random.uniform(k_bh, (5 * R,), jnp.float32, -bound_h, bound_h)
    b = b_i2h + b_h2h

    w_fused = jnp.concatenate([wx, wh], axis=0)        # (E+R, 5R) bf16

    # --- full T-step sequence in one pallas_call ---------------------------
    hseq, h_last, c_last = lstm_core_sequence(xs, (h0, c0), w_fused, b)
    hseq, h_last, c_last = jax.block_until_ready((hseq, h_last, c_last))

    ref_hseq, ref_h, ref_c = _reference_sequence(xs, (h0, c0), wx, wh, b)
    assert jnp.allclose(hseq, ref_hseq, atol=2e-3, rtol=2e-3)
    assert jnp.allclose(h_last, ref_h, atol=2e-3, rtol=2e-3)
    assert jnp.allclose(c_last, ref_c, atol=2e-3, rtol=2e-3)

    # --- single-step module parity (LSTMCore.forward) -----------------------
    out1, (nh1, nc1) = lstm_core_forward(xs[0], (h0, c0), wx, wh, b)
    out1, nh1, nc1 = jax.block_until_ready((out1, nh1, nc1))
    ref1_h, ref1_hT, ref1_cT = _reference_sequence(xs[:1], (h0, c0), wx, wh, b)
    assert jnp.allclose(out1, ref1_h[0], atol=2e-3, rtol=2e-3)
    assert jnp.allclose(nh1[0], ref1_hT, atol=2e-3, rtol=2e-3)
    assert jnp.allclose(nc1[0], ref1_cT, atol=2e-3, rtol=2e-3)

    print("KERNEL_OK")
</pallas_src>

<mosaic_0001>
module attributes {stable_mosaic.version = 11 : i64} {
  func.func @lstm_seq_kernel(%arg0: i32, %arg1: memref<1x8x128xbf16, #tpu.memory_space<vmem>>, %arg2: memref<8x128xf32, #tpu.memory_space<vmem>>, %arg3: memref<8x128xf32, #tpu.memory_space<vmem>>, %arg4: memref<256x640xbf16, #tpu.memory_space<vmem>>, %arg5: memref<1x640xf32, #tpu.memory_space<vmem>>, %arg6: memref<1x8x128xf32, #tpu.memory_space<vmem>>, %arg7: memref<8x128xf32, #tpu.memory_space<vmem>>, %arg8: memref<8x128xf32, #tpu.memory_space<vmem>>, %arg9: memref<8x128xf32, #tpu.memory_space<vmem>>, %arg10: memref<8x128xf32, #tpu.memory_space<vmem>>) attributes {dimension_semantics = [#tpu.dimension_semantics<arbitrary>], iteration_bounds = array<i64: 8>, scalar_prefetch = 0 : i64, scratch_operands = 2 : i64, tpu.core_type = #tpu.core_type<tc>, window_params = [{transform_indices = @transform_0, window_bounds = array<i64: 1, 8, 128>}, {pipeline_mode = #tpu.pipeline_mode<synchronous>, transform_indices = @transform_1, window_bounds = array<i64: 8, 128>}, {pipeline_mode = #tpu.pipeline_mode<synchronous>, transform_indices = @transform_2, window_bounds = array<i64: 8, 128>}, {pipeline_mode = #tpu.pipeline_mode<synchronous>, transform_indices = @transform_3, window_bounds = array<i64: 256, 640>}, {pipeline_mode = #tpu.pipeline_mode<synchronous>, transform_indices = @transform_4, window_bounds = array<i64: 1, 640>}, {transform_indices = @transform_5, window_bounds = array<i64: 1, 8, 128>}, {pipeline_mode = #tpu.pipeline_mode<synchronous>, transform_indices = @transform_6, window_bounds = array<i64: 8, 128>}, {pipeline_mode = #tpu.pipeline_mode<synchronous>, transform_indices = @transform_7, window_bounds = array<i64: 8, 128>}]} {
    %c0_i32 = arith.constant 0 : i32
    %0 = arith.cmpi eq, %arg0, %c0_i32 : i32
    %1 = arith.extui %0 : i1 to i32
    %c0_i32_0 = arith.constant 0 : i32
    %2 = arith.cmpi ne, %1, %c0_i32_0 : i32
    scf.if %2 {
      %c0_23 = arith.constant 0 : index
      %c0_24 = arith.constant 0 : index
      %38 = vector.load %arg2[%c0_23, %c0_24] : memref<8x128xf32, #tpu.memory_space<vmem>>, vector<8x128xf32>
      %c0_25 = arith.constant 0 : index
      %c0_26 = arith.constant 0 : index
      %39 = vector.load %arg9[%c0_25, %c0_26] : memref<8x128xf32, #tpu.memory_space<vmem>>, vector<8x128xf32>
      tpu.vector_store %arg9[%c0_25, %c0_26], %38 {strides = array<i32>} : memref<8x128xf32, #tpu.memory_space<vmem>>, vector<8x128xf32>,
      %c0_27 = arith.constant 0 : index
      %c0_28 = arith.constant 0 : index
      %40 = vector.load %arg3[%c0_27, %c0_28] : memref<8x128xf32, #tpu.memory_space<vmem>>, vector<8x128xf32>
      %c0_29 = arith.constant 0 : index
      %c0_30 = arith.constant 0 : index
      %41 = vector.load %arg10[%c0_29, %c0_30] : memref<8x128xf32, #tpu.memory_space<vmem>>, vector<8x128xf32>
      tpu.vector_store %arg10[%c0_29, %c0_30], %40 {strides = array<i32>} : memref<8x128xf32, #tpu.memory_space<vmem>>, vector<8x128xf32>,
    } else {
    }
    %c0 = arith.constant 0 : index
    %c0_1 = arith.constant 0 : index
    %c0_2 = arith.constant 0 : index
    %3 = vector.load %arg1[%c0, %c0_1, %c0_2] : memref<1x8x128xbf16, #tpu.memory_space<vmem>>, vector<1x8x128xbf16>
    %4 = vector.shape_cast %3 : vector<1x8x128xbf16> to vector<8x128xbf16>
    %c0_3 = arith.constant 0 : index
    %c0_4 = arith.constant 0 : index
    %5 = vector.load %arg9[%c0_3, %c0_4] : memref<8x128xf32, #tpu.memory_space<vmem>>, vector<8x128xf32>
    %c0_5 = arith.constant 0 : index
    %c0_6 = arith.constant 0 : index
    %6 = vector.load %arg10[%c0_5, %c0_6] : memref<8x128xf32, #tpu.memory_space<vmem>>, vector<8x128xf32>
    %7 = arith.truncf %5 : vector<8x128xf32> to vector<8x128xbf16>
    %8 = tpu.concatenate %4, %7 in 1 : vector<8x128xbf16>, vector<8x128xbf16> -> vector<8x256xbf16>
    %c0_7 = arith.constant 0 : index
    %c0_8 = arith.constant 0 : index
    %9 = vector.load %arg4[%c0_7, %c0_8] : memref<256x640xbf16, #tpu.memory_space<vmem>>, vector<256x640xbf16>
    %cst = arith.constant dense<0.000000e+00> : vector<8x640xf32>
    %10 = tpu.matmul %8, %9, %cst {dimension_numbers = #tpu.dot_dimension_numbers<[1], [0], [0], [1], [0, 0, 1, 1], [], []>} : vector<8x256xbf16>, vector<256x640xbf16>, vector<8x640xf32> -> vector<8x640xf32>
    %c0_9 = arith.constant 0 : index
    %c0_10 = arith.constant 0 : index
    %11 = vector.load %arg5[%c0_9, %c0_10] : memref<1x640xf32, #tpu.memory_space<vmem>>, vector<1x640xf32>
    %12 = vector.broadcast %11 : vector<1x640xf32> to vector<8x640xf32>
    %13 = arith.addf %10, %12 : vector<8x640xf32>
    %14 = vector.extract_strided_slice %13 {offsets = [0, 0], sizes = [8, 384], strides = [1, 1]} : vector<8x640xf32> to vector<8x384xf32>
    %15 = arith.negf %14 : vector<8x384xf32>
    %16 = math.exp %15 : vector<8x384xf32>
    %cst_11 = arith.constant 1.000000e+00 : f32
    %17 = vector.broadcast %cst_11 : f32 to vector<8x384xf32>
    %18 = arith.addf %17, %16 : vector<8x384xf32>
    %19 = arith.divf %17, %18 : vector<8x384xf32>
    %20 = vector.extract_strided_slice %19 {offsets = [0, 0], sizes = [8, 128], strides = [1, 1]} : vector<8x384xf32> to vector<8x128xf32>
    %21 = vector.extract_strided_slice %19 {offsets = [0, 128], sizes = [8, 128], strides = [1, 1]} : vector<8x384xf32> to vector<8x128xf32>
    %22 = vector.extract_strided_slice %19 {offsets = [0, 256], sizes = [8, 128], strides = [1, 1]} : vector<8x384xf32> to vector<8x128xf32>
    %23 = vector.extract_strided_slice %13 {offsets = [0, 384], sizes = [8, 128], strides = [1, 1]} : vector<8x640xf32> to vector<8x128xf32>
    %24 = vector.extract_strided_slice %13 {offsets = [0, 512], sizes = [8, 128], strides = [1, 1]} : vector<8x640xf32> to vector<8x128xf32>
    %25 = arith.maximumf %23, %24 : vector<8x128xf32>
    %26 = arith.mulf %21, %6 : vector<8x128xf32>
    %27 = arith.mulf %20, %25 : vector<8x128xf32>
    %28 = arith.addf %26, %27 : vector<8x128xf32>
    %29 = math.tanh %28 : vector<8x128xf32>
    %30 = arith.mulf %22, %29 : vector<8x128xf32>
    %c0_12 = arith.constant 0 : index
    %c0_13 = arith.constant 0 : index
    %31 = vector.load %arg9[%c0_12, %c0_13] : memref<8x128xf32, #tpu.memory_space<vmem>>, vector<8x128xf32>
    tpu.vector_store %arg9[%c0_12, %c0_13], %30 {strides = array<i32>} : memref<8x128xf32, #tpu.memory_space<vmem>>, vector<8x128xf32>,
    %c0_14 = arith.constant 0 : index
    %c0_15 = arith.constant 0 : index
    %32 = vector.load %arg10[%c0_14, %c0_15] : memref<8x128xf32, #tpu.memory_space<vmem>>, vector<8x128xf32>
    tpu.vector_store %arg10[%c0_14, %c0_15], %28 {strides = array<i32>} : memref<8x128xf32, #tpu.memory_space<vmem>>, vector<8x128xf32>,
    %c0_16 = arith.constant 0 : index
    %c0_17 = arith.constant 0 : index
    %c0_18 = arith.constant 0 : index
    %33 = vector.load %arg6[%c0_16, %c0_17, %c0_18] : memref<1x8x128xf32, #tpu.memory_space<vmem>>, vector<1x8x128xf32>
    %34 = vector.shape_cast %33 : vector<1x8x128xf32> to vector<8x128xf32>
    %35 = vector.shape_cast %30 : vector<8x128xf32> to vector<1x8x128xf32>
    tpu.vector_store %arg6[%c0_16, %c0_17, %c0_18], %35 {strides = array<i32>} : memref<1x8x128xf32, #tpu.memory_space<vmem>>, vector<1x8x128xf32>,
    %c0_19 = arith.constant 0 : index
    %c0_20 = arith.constant 0 : index
    %36 = vector.load %arg7[%c0_19, %c0_20] : memref<8x128xf32, #tpu.memory_space<vmem>>, vector<8x128xf32>
    tpu.vector_store %arg7[%c0_19, %c0_20], %30 {strides = array<i32>} : memref<8x128xf32, #tpu.memory_space<vmem>>, vector<8x128xf32>,
    %c0_21 = arith.constant 0 : index
    %c0_22 = arith.constant 0 : index
    %37 = vector.load %arg8[%c0_21, %c0_22] : memref<8x128xf32, #tpu.memory_space<vmem>>, vector<8x128xf32>
    tpu.vector_store %arg8[%c0_21, %c0_22], %28 {strides = array<i32>} : memref<8x128xf32, #tpu.memory_space<vmem>>, vector<8x128xf32>,
    return
  }
  func.func @transform_0(%arg0: i32) -> (i32, i32, i32) {
    %c0_i32 = arith.constant 0 : i32
    %c0_i32_0 = arith.constant 0 : i32
    %c0_i32_1 = arith.constant 0 : i32
    return %arg0, %c0_i32, %c0_i32_0 : i32, i32, i32
  }
  func.func @transform_1(%arg0: i32) -> (i32, i32) {
    %c0_i32 = arith.constant 0 : i32
    %c0_i32_0 = arith.constant 0 : i32
    %c0_i32_1 = arith.constant 0 : i32
    return %c0_i32, %c0_i32_0 : i32, i32
  }
  func.func @transform_2(%arg0: i32) -> (i32, i32) {
    %c0_i32 = arith.constant 0 : i32
    %c0_i32_0 = arith.constant 0 : i32
    %c0_i32_1 = arith.constant 0 : i32
    return %c0_i32, %c0_i32_0 : i32, i32
  }
  func.func @transform_3(%arg0: i32) -> (i32, i32) {
    %c0_i32 = arith.constant 0 : i32
    %c0_i32_0 = arith.constant 0 : i32
    %c0_i32_1 = arith.constant 0 : i32
    return %c0_i32, %c0_i32_0 : i32, i32
  }
  func.func @transform_4(%arg0: i32) -> (i32, i32) {
    %c0_i32 = arith.constant 0 : i32
    %c0_i32_0 = arith.constant 0 : i32
    %c0_i32_1 = arith.constant 0 : i32
    return %c0_i32, %c0_i32_0 : i32, i32
  }
  func.func @transform_5(%arg0: i32) -> (i32, i32, i32) {
    %c0_i32 = arith.constant 0 : i32
    %c0_i32_0 = arith.constant 0 : i32
    %c0_i32_1 = arith.constant 0 : i32
    return %arg0, %c0_i32, %c0_i32_0 : i32, i32, i32
  }
  func.func @transform_6(%arg0: i32) -> (i32, i32) {
    %c0_i32 = arith.constant 0 : i32
    %c0_i32_0 = arith.constant 0 : i32
    %c0_i32_1 = arith.constant 0 : i32
    return %c0_i32, %c0_i32_0 : i32, i32
  }
  func.func @transform_7(%arg0: i32) -> (i32, i32) {
    %c0_i32 = arith.constant 0 : i32
    %c0_i32_0 = arith.constant 0 : i32
    %c0_i32_1 = arith.constant 0 : i32
    return %c0_i32, %c0_i32_0 : i32, i32
  }
}

</mosaic_0001>

<bundles_post_ra>
// kernel: tpu_custom_call.1
= control target key start
LH: loop header
LB: loop body
LE: loop exit
PB: predicated region body
PF: predicated region fallthrough
CT: control target
= control target key end

     0   :  { %13 = vsyncpa [#allocation5], 0  ;;  %s2146_s0 = inlined_call_operand.hbm [shape: bf16[8,8,128], index: 0, kind: input, shape index: {}]   ;;  %s2147_s1 = inlined_call_operand.hbm [shape: f32[8,128], index: 1, kind: input, shape index: {}]   ;;  %s2148_s2 = inlined_call_operand.hbm [shape: f32[8,128], index: 2, kind: input, shape index: {}]   ;;  %s2149_s3 = inlined_call_operand.hbm [shape: bf16[256,640], index: 3, kind: input, shape index: {}]   ;;  %s2150_s4 = inlined_call_operand.vmem [shape: f32[1,640], index: 4, kind: input, shape index: {}]   ;;  %s2151_s5 = inlined_call_operand.hbm [shape: f32[8,8,128], index: 5, kind: output, shape index: {0}]   ;;  %s2152_s6 = inlined_call_operand.hbm [shape: f32[8,128], index: 6, kind: output, shape index: {1}]   ;;  %s2153_s7 = inlined_call_operand.hbm [shape: f32[8,128], index: 7, kind: output, shape index: {2}]  }
   0x1   :  { %15 = vsyncpa [#allocation5 + $0x1], 0 }
   0x2   :  { %16 = vsyncpa [#allocation8], 0 }
   0x3   :  { %17 = vsyncpa [#allocation11], 0 }
   0x4   :  { %18 = vsyncpa [#allocation6], 0 }
   0x5   :  { %20 = vsyncpa [#allocation6 + $0x1], 0 }
   0x6   :  { %21 = vsyncpa [#allocation14], 0  ;;  %s1831_s24 = smov 0   ;;  %s1833_s25 = smov 0  }
   0x7   :  { %s1835_s26 = smov 0   ;;  %s1837_s27 = smov 0  }
   0x8 LB: > { %s1852_s28 = sadd.s32 4294967295, %s1780_s27   ;;  %s1189_s29 = sadd.s32 4294967294, %s1780_s27   ;;  %s1780_s27 = sphi %s1837_s27, %s2184_s27   ;;  %s1776_s26 = sphi %s1835_s26, %s2183_s26   ;;  %s1772_s25 = sphi %s1833_s25, %s2182_s25   ;;  %s1768_s24 = sphi %s1831_s24, %s2181_s24  }
   0x9   : > { %p47_p0 = scmp.ne.s32.totalorder %s1772_s25, %s1768_s24  ;;  %p2154_p1 = scmp.eq.s32.totalorder %s1852_s28, 0 }
   0xa   : > { %p161_p3 = scmp.eq.s32.totalorder %s1189_s29, 7  ;;  %p1190_p5 = scmp.ge.s32.totalorder %s1780_s27, 1 }
   0xb   : > { %p1861_p4 = por %p2154_p1, %p47_p0  ;;  %p210_p7 = scmp.lt.s32.totalorder %s1780_s27, 9 }
   0xc   : > { %p1866_p6 = por %p161_p3, %p47_p0  ;;  %s1782_s10 = smov [#allocation7]  }
   0xd   : > { %s2157_s30 = scalar_select %p1861_p4, 1, 0 }
   0xe   : > { %s2158_s8 = scalar_select %p1866_p6, 1, 0 }
   0xf   : > { %p1872_p9 = pnand %p1190_p5, %p210_p7  ;;  %s223_s11 = sshll.u32 %s1782_s10, 4  ;;  %s224_s11 = int_to_ptr.vmem [resolvable:$true] %s223_s11 }
  0x10   : > { %s1783_s12 = smov [#allocation9]   ;;  %s1784_s15 = smov [#allocation10]  }
  0x11   : > { %s2159_s9 = scalar_select %p1872_p9, 1, 0 }
  0x12   : > { %p1341_p10 = pneg %p1872_p9  ;;  %s234_s13 = sshll.u32 %s1783_s12, 4  ;;  %s1884_s13 = int_to_ptr.vmem [resolvable:$true] %s234_s13 }
  0x13   : > { %s244_s16 = sshll.u32 %s1784_s15, 4  ;;  %s1536_s19 = scalar_lea.hbm %s2147_s1, 128  ;;  %s1886_s16 = int_to_ptr.vmem [resolvable:$true] %s244_s16 }
  0x14   : > { %p1880_p11 = pnand %p1341_p10, %p2154_p1  ;;  %p1537_p12 = scmp.ne.s32.totalorder %s2147_s1, %s1536_s19 }
  0x15   : > { %p1543_p5 = scmp.lt.u32.totalorder %s1536_s19, %s2147_s1 }
  0x16   : > { %p1896_p13 = pneg %p1880_p11 }
  0x18   : > { %p1539_p0 = pnand %p1896_p13, %p1537_p12 }
  0x1a   : > { %p1540_p3 = pneg %p1539_p0 }
  0x1c   : > { %p1545_p7 = pnand %p1543_p5, %p1540_p3 }
  0x1e   : > { %1548 = shalt.err (!%p1545_p7)
}
  0x1f   : > { %s1549_s10 = scalar_lea.vmem %s224_s11, 128  ;;  %p1557_p2 = scmp.lt.s32.totalorder %s224_s11, %s224_s11 }
  0x20   : > { %p1550_p10 = scmp.ne.s32.totalorder %s224_s11, %s1549_s10  ;;  %p1558_p6 = scmp.lt.s32.totalorder %s1549_s10, %s1549_s10 }
  0x22   : > { %p1552_p8 = pnand %p1550_p10, %p1896_p13  ;;  %p1559_p4 = por %p1558_p6, %p1557_p2 }
  0x24   : > { %p1553_p1 = pneg %p1552_p8 }
  0x26   : > { %p1560_p9 = pnand %p1559_p4, %p1553_p1 }
  0x28   : > { %1563 = shalt.err (!%p1560_p9)
}
  0x29   : > { %1344 = dma.hbm_to_vmem [thread:$0]  (!%p1880_p11), %s2147_s1, 128, %s224_s11, [#allocation8]  }
  0x2a   : > { %s1564_s19 = scalar_lea.hbm %s2148_s2, 128 }
  0x2b   : > { %p1565_p8 = scmp.ne.s32.totalorder %s2148_s2, %s1564_s19  ;;  %p1571_p1 = scmp.lt.u32.totalorder %s1564_s19, %s2148_s2 }
  0x2d   : > { %p1567_p12 = pnand %p1565_p8, %p1896_p13 }
  0x2f   : > { %p1568_p2 = pneg %p1567_p12 }
  0x31   : > { %p1573_p4 = pnand %p1571_p1, %p1568_p2 }
  0x33   : > { %1576 = shalt.err (!%p1573_p4)
}
  0x34   : > { %s1577_s11 = scalar_lea.vmem %s1884_s13, 128  ;;  %p1585_p3 = scmp.lt.s32.totalorder %s1884_s13, %s1884_s13 }
  0x35   : > { %p1578_p6 = scmp.ne.s32.totalorder %s1884_s13, %s1577_s11  ;;  %p1586_p5 = scmp.lt.s32.totalorder %s1577_s11, %s1577_s11 }
  0x37   : > { %p1580_p9 = pnand %p1578_p6, %p1896_p13  ;;  %p1587_p7 = por %p1586_p5, %p1585_p3 }
  0x39   : > { %p1581_p0 = pneg %p1580_p9 }
  0x3b   : > { %p1588_p10 = pnand %p1587_p7, %p1581_p0 }
  0x3d   : > { %1591 = shalt.err (!%p1588_p10)
}
  0x3e   : > { %1347 = dma.hbm_to_vmem [thread:$0]  (!%p1880_p11), %s2148_s2, 128, %s1884_s13, [#allocation8]  }
  0x3f   : > { %s1592_s18 = scalar_lea.hbm %s2149_s3, 10240 }
  0x40   : > { %p1593_p8 = scmp.ne.s32.totalorder %s2149_s3, %s1592_s18  ;;  %p1599_p1 = scmp.lt.u32.totalorder %s1592_s18, %s2149_s3 }
  0x42   : > { %p1595_p12 = pnand %p1593_p8, %p1896_p13 }
  0x44   : > { %p1596_p2 = pneg %p1595_p12 }
  0x46   : > { %p1601_p4 = pnand %p1599_p1, %p1596_p2 }
  0x48   : > { %1604 = shalt.err (!%p1601_p4)
}
  0x49   : > { %s1605_s13 = scalar_lea.vmem %s1886_s16, 10240  ;;  %p1613_p3 = scmp.lt.s32.totalorder %s1886_s16, %s1886_s16 }
  0x4a   : > { %p1606_p6 = scmp.ne.s32.totalorder %s1886_s16, %s1605_s13  ;;  %p1614_p5 = scmp.lt.s32.totalorder %s1605_s13, %s1605_s13 }
  0x4c   : > { %p1608_p9 = pnand %p1606_p6, %p1896_p13  ;;  %p1615_p7 = por %p1614_p5, %p1613_p3 }
  0x4e   : > { %p1609_p0 = pneg %p1608_p9 }
  0x50   : > { %p1616_p10 = pnand %p1615_p7, %p1609_p0 }
  0x52   : > { %1619 = shalt.err (!%p1616_p10)
}
  0x53   : > { %s1785_s29 = smov 320   ;;  %s1786_s22 = smov 20  }
  0x54   : > { %1350 = dma.hbm_to_vmem [thread:$0]  (!%p1880_p11), %s2149_s3, 10240, %s1886_s16, [#allocation11], %s1785_s29, %s1785_s29, %s1786_s22  }
  0x55   : > { %s1959_s12 = sadd.s32 1, %s1780_s27   ;;  %s34_s17 = sadd.s32 1, %s1776_s26 }
  0x56   : > { %s31_s15 = ssub.s32 %s1780_s27, %s1959_s12  ;;  %p41_p8 = scmp.ne.s32.totalorder %s1776_s26, %s1772_s25 }
  0x57   : > { %p32_p13 = scmp.eq.s32.totalorder %s31_s15, 0  ;;  %p42_p12 = scmp.eq.s32.totalorder %s1780_s27, 0 }
  0x58   : > { %p1362_p2 = scmp.lt.s32.totalorder %s1780_s27, 8  ;;  %p2162_p4 = scmp.eq.s32.totalorder %s1852_s28, 7 }
  0x59   : > { %s1969_s18 = scalar_select %p32_p13, %s1776_s26, %s34_s17  }
  0x5a   : > { %p43_p1 = por %p42_p12, %p41_p8  ;;  %p1973_p6 = por %p2162_p4, %p41_p8 }
  0x5b   : > { %s261_s14 = sand.u32 1, %s1776_s26   ;;  %s1196_s20 = sshll.u32 %s1780_s27, 6 }
  0x5c   : > { %s1195_s16 = sshll.u32 %s261_s14, 2  ;;  %s1982_s13 = scalar_lea.hbm %s2146_s0, %s1196_s20 }
  0x5d   : > { %s265_s29 = scalar_lea.vmem [#allocation4], %s1195_s16  ;;  %p1984_p11 = pnand %p1362_p2, %p43_p1 }
  0x5e   : > { %s272_s22 = sshll.u32 %s265_s29, 4  ;;  %s262_s10 = scalar_lea.sflag [#allocation5], %s261_s14  ;;  %s1988_s22 = int_to_ptr.vmem [resolvable:$true] %s272_s22 }
  0x5f   : > { %s1620_s15 = scalar_lea.hbm %s1982_s13, 64  ;;  %p1622_p0 = pneg %p1984_p11 }
  0x60   : > { %p1621_p9 = scmp.ne.s32.totalorder %s1982_s13, %s1620_s15  ;;  %s1625_s16 = scalar_lea.hbm %s2146_s0, 512 }
  0x61   : > { %p1626_p7 = scmp.lt.u32.totalorder %s1982_s13, %s2146_s0  ;;  %p1627_p10 = scmp.lt.u32.totalorder %s1625_s16, %s1620_s15 }
  0x62   : > { %p1623_p3 = pnand %p1622_p0, %p1621_p9  ;;  %p1629_p8 = scmp.lt.u32.totalorder %s1620_s15, %s1982_s13 }
  0x63   : > { %p1628_p13 = por %p1627_p10, %p1626_p7 }
  0x64   : > { %p1624_p5 = pneg %p1623_p3 }
  0x65   : > { %p1630_p12 = por %p1629_p8, %p1628_p13 }
  0x67   : > { %p1631_p2 = pnand %p1630_p12, %p1624_p5 }
  0x69   : > { %1634 = shalt.err (!%p1631_p2)
}
  0x6a   : > { %s1635_s14 = scalar_lea.vmem %s1988_s22, 64  ;;  %s1787_s29 = smov [#allocation4]  }
  0x6b   : > { %p1636_p1 = scmp.ne.s32.totalorder %s1988_s22, %s1635_s14  ;;  %s1640_s17 = sshll.u32 %s1787_s29, 4  ;;  %s1641_s17 = int_to_ptr.vmem [resolvable:$false] %s1640_s17 }
  0x6c   : > { %s1642_s20 = scalar_lea.vmem %s1641_s17, 128  ;;  %p1643_p3 = scmp.lt.s32.totalorder %s1988_s22, %s1641_s17 }
  0x6d   : > { %p1638_p4 = pnand %p1636_p1, %p1622_p0  ;;  %p1644_p7 = scmp.lt.s32.totalorder %s1642_s20, %s1635_s14 }
  0x6f   : > { %p1639_p9 = pneg %p1638_p4  ;;  %p1645_p10 = por %p1644_p7, %p1643_p3 }
  0x71   : > { %p1646_p13 = pnand %p1645_p10, %p1639_p9 }
  0x73   : > { %1649 = shalt.err (!%p1646_p13)
}
  0x74   : > { %1354 = dma.hbm_to_vmem [thread:$0]  (!%p1984_p11), %s1982_s13, 64, %s1988_s22, %s262_s10  }
  0x75   : > { %p2165_p5 = scmp.ne.s32.totalorder %s2159_s9, 0 }
  0x76   : > { %s2018_s15 = sand.u32 (!%p2165_p5), 1, %s1772_s25   ;;  %p2166_p0 = scmp.ne.s32.totalorder (!%p2165_p5), %s2157_s30, 0 }
  0x77   : > { %281 = sbr.rel (%p2165_p5) target bundleno = 539 (0x21b), region = 40  ;;  %s1198_s16 = sshll.u32 (!%p2165_p5), %s2018_s15, 2 }
  0x78   : > { %s284_s21 = scalar_lea.sflag (!%p2165_p5), [#allocation5], %s2018_s15  ;;  %s2022_s23 = scalar_lea.vmem (!%p2165_p5), [#allocation4], %s1198_s16 }
  0x7e   : > { %1747 = dma.done.wait (%p2166_p0), %s284_s21, 64  }
  0x7f   : > { %1749 = vsyncadd (%p2166_p0), %s284_s21, 4294967232  ;;  %p2167_p11 = scmp.eq.s32.totalorder %s1852_s28, 0 }
  0x81   : > { %1751 = dma.done.wait (%p2167_p11), [#allocation8], 256   ;;  %p2168_p8 = pmov %p2167_p11 }
  0x83   : > { %1753 = vsyncadd (%p2168_p8), [#allocation8], 4294967040  ;;  %p2169_p12 = pmov %p2168_p8 }
  0x84   : > { %p2170_p2 = pmov %p2168_p8 }
  0x85   : > { %1755 = dma.done.wait (%p2169_p12), [#allocation11], 10240  }
  0x86   : > { %1757 = vsyncadd (%p2170_p2), [#allocation11], 4294957056  ;;  %s1202_s9 = sshll.u32 %s2018_s15, 3  ;;  %p2171_p1 = scmp.ne.s32.totalorder %s1852_s28, 0 }
  0x87   : > { %s2037_s13 = scalar_lea.vmem [#allocation12], %s1202_s9  ;;  %v335_v0 = vld [vmem:[#allocation7] sm:$0xff] (!%p2171_p1)  ;;  %v337_v1 = vld [vmem:[#allocation9] sm:$0xff] (!%p2171_p1) }
  0x88   : > { %334 = sbr.rel (%p2171_p1) target bundleno = 143 (0x8f), region = 60  ;;  %336 = vst [vmem:[#allocation2] sm:$0xff] (!%p2171_p1), %v335_v0  ;;  %338 = vst [vmem:[#allocation3] sm:$0xff] (!%p2171_p1), %v337_v1 }
  0x8f PF: > { %v1410_v2 = vld [vmem:[#allocation10 + $0x4] ss:$20 sps:$4 sm:$0xff]   ;;  %v1412_v3 = vld [vmem:[#allocation10] ss:$20 sps:$4 sm:$0xff]   ;;  %v1415_v5 = vld [vmem:[#allocation10 + $0x28] ss:$20 sps:$4 sm:$0xff]  }
  0x90   : > { %882 = vmatprep.subr.bf16.mxu0 %v1410_v2  ;;  %v1413_v4 = vld [vmem:[#allocation10 + $0x2c] ss:$20 sps:$4 sm:$0xff]   ;;  %v1416_v6 = vld [vmem:[#allocation10 + $0x54] ss:$20 sps:$4 sm:$0xff]   ;;  %v1418_v7 = vld [vmem:[#allocation10 + $0x50] ss:$20 sps:$4 sm:$0xff]  }
  0x91   : > { %883 = vmatpush1.bf16.msra.mxu0 %v1412_v3  ;;  %v1419_v8 = vld [vmem:[#allocation10 + $0x7c] ss:$20 sps:$4 sm:$0xff]   ;;  %v1428_v9 = vld [vmem:[#allocation10 + $0xc] ss:$20 sps:$4 sm:$0xff]   ;;  %v1434_v12 = vld [vmem:[#allocation10 + $0x34] ss:$20 sps:$4 sm:$0xff]  }
  0x92   : > { %884 = vmatprep.subr.bf16.mxu0 %v1413_v4  ;;  %v1421_v10 = vld [vmem:[#allocation10 + $0x78] ss:$20 sps:$4 sm:$0xff]   ;;  %923 = vmatprep.subr.bf16.mxu1 %v1428_v9  ;;  %v1432_v11 = vld [vmem:[#allocation10 + $0x8] ss:$20 sps:$4 sm:$0xff]   ;;  %v1438_v14 = vld [vmem:[#allocation10 + $0x30] ss:$20 sps:$4 sm:$0xff]  }
  0x93   : > { %v1422_v13 = vld [vmem:[#allocation10 + $0xa4] ss:$20 sps:$4 sm:$0xff]   ;;  %924 = vmatpush1.bf16.msra.mxu1 %v1432_v11  ;;  %v1440_v15 = vld [vmem:[#allocation10 + $0x5c] ss:$20 sps:$4 sm:$0xff]   ;;  %v1424_v16 = vld [vmem:[#allocation10 + $0xa0] ss:$20 sps:$4 sm:$0xff]  }
  0x94   : > { %925 = vmatprep.subr.bf16.mxu1 %v1434_v12  ;;  %v1425_v17 = vld [vmem:[#allocation10 + $0xcc] ss:$20 sps:$4 sm:$0xff]   ;;  %v1446_v19 = vld [vmem:[#allocation10 + $0x84] ss:$20 sps:$4 sm:$0xff]   ;;  %v1427_v20 = vld [vmem:[#allocation10 + $0xc8] ss:$20 sps:$4 sm:$0xff]  }
  0x95   : > { %885 = vmatpush1.bf16.msra.mxu0 %v1415_v5  ;;  %v1444_v18 = vld [vmem:[#allocation10 + $0x58] ss:$20 sps:$4 sm:$0xff]   ;;  %v1430_v21 = vld [vmem:[#allocation10 + $0xf4] ss:$20 sps:$4 sm:$0xff]   ;;  %v1433_v24 = vld [vmem:[#allocation10 + $0xf0] ss:$20 sps:$4 sm:$0xff]  }
  0x96   : > { %886 = vmatprep.subr.bf16.mxu0 %v1416_v6  ;;  %v1450_v22 = vld [vmem:[#allocation10 + $0x80] ss:$20 sps:$4 sm:$0xff]   ;;  %v1436_v25 = vld [vmem:[#allocation10 + $0x11c] ss:$20 sps:$4 sm:$0xff]   ;;  %v1439_v28 = vld [vmem:[#allocation10 + $0x118] ss:$20 sps:$4 sm:$0xff]  }
  0x97   : > { %926 = vmatpush1.bf16.msra.mxu1 %v1438_v14  ;;  %v1452_v23 = vld [vmem:[#allocation10 + $0xac] ss:$20 sps:$4 sm:$0xff]   ;;  %v1456_v26 = vld [vmem:[#allocation10 + $0xa8] ss:$20 sps:$4 sm:$0xff]   ;;  %v1442_v29 = vld [vmem:[#allocation10 + $0x144] ss:$20 sps:$4 sm:$0xff]  }
  0x98   : > { %927 = vmatprep.subr.bf16.mxu1 %v1440_v15  ;;  %v1458_v27 = vld [vmem:[#allocation10 + $0xd4] ss:$20 sps:$4 sm:$0xff]   ;;  %v1462_v30 = vld [vmem:[#allocation10 + $0xd0] ss:$20 sps:$4 sm:$0xff]   ;;  %v1448_v33 = vld [vmem:[#allocation10 + $0x16c] ss:$20 sps:$4 sm:$0xff]  }
  0x99   : > { %887 = vmatpush1.bf16.msra.mxu0 %v1418_v7  ;;  %v1464_v31 = vld [vmem:[#allocation10 + $0xfc] ss:$20 sps:$4 sm:$0xff]   ;;  %v1445_v32 = vld [vmem:[#allocation10 + $0x140] ss:$20 sps:$4 sm:$0xff]   ;;  %v1468_v34 = vld [vmem:[#allocation10 + $0xf8] ss:$20 sps:$4 sm:$0xff]  }
  0x9a   : > { %888 = vmatprep.subr.bf16.mxu0 %v1419_v8  ;;  %v1470_v35 = vld [vmem:[#allocation10 + $0x124] ss:$20 sps:$4 sm:$0xff]   ;;  %v1451_v37 = vld [vmem:[#allocation10 + $0x168] ss:$20 sps:$4 sm:$0xff]   ;;  %v1474_v40 = vld [vmem:[#allocation10 + $0x120] ss:$20 sps:$4 sm:$0xff]  }
  0x9b   : > { %928 = vmatpush1.bf16.msra.mxu1 %v1444_v18  ;;  %v340_v36 = vld [vmem:[#allocation2] sm:$0xff]  ;;  %v1454_v39 = vld [vmem:[#allocation10 + $0x194] ss:$20 sps:$4 sm:$0xff]   ;;  %v1476_v41 = vld [vmem:[#allocation10 + $0x14c] ss:$20 sps:$4 sm:$0xff]   ;;  %s1788_s11 = smov [#allocation13]  }
  0x9c   : > { %929 = vmatprep.subr.bf16.mxu1 %v1446_v19  ;;  %v2041_v38 = vpack.c.bf16 %v340_v36, %v340_v36  ;;  %v1457_v42 = vld [vmem:[#allocation10 + $0x190] ss:$20 sps:$4 sm:$0xff]   ;;  %v1480_v44 = vld [vmem:[#allocation10 + $0x148] ss:$20 sps:$4 sm:$0xff]   ;;  %v1463_v46 = vld [vmem:[#allocation10 + $0x1b8] ss:$20 sps:$4 sm:$0xff]  }
  0x9d   : > { %889 = vmatpush1.bf16.msra.mxu0 %v1421_v10  ;;  %v1460_v43 = vld [vmem:[#allocation10 + $0x1bc] ss:$20 sps:$4 sm:$0xff]   ;;  %v1482_v45 = vld [vmem:[#allocation10 + $0x174] ss:$20 sps:$4 sm:$0xff]   ;;  %v1466_v47 = vld [vmem:[#allocation10 + $0x1e4] ss:$20 sps:$4 sm:$0xff]  }
  0x9e   : > { %890 = vmatprep.subr.bf16.mxu0 %v1422_v13  ;;  %914 = vmatprep.mubr.bf16.mxu0 %v2041_v38  ;;  %v1486_v48 = vld [vmem:[#allocation10 + $0x170] ss:$20 sps:$4 sm:$0xff]   ;;  %v1469_v50 = vld [vmem:[#allocation10 + $0x1e0] ss:$20 sps:$4 sm:$0xff]   ;;  %v1490_v52 = vld [vmem:[#allocation10 + $0x198] ss:$20 sps:$4 sm:$0xff]  }
  0x9f   : > { %930 = vmatpush1.bf16.msra.mxu1 %v1450_v22  ;;  %955 = vmatprep.mubr.bf16.mxu1 %v2041_v38  ;;  %v1488_v49 = vld [vmem:[#allocation10 + $0x19c] ss:$20 sps:$4 sm:$0xff]   ;;  %v1472_v51 = vld [vmem:[#allocation10 + $0x20c] ss:$20 sps:$4 sm:$0xff]   ;;  %v1493_v53 = vld [vmem:[#allocation10 + $0x1c4] ss:$20 sps:$4 sm:$0xff]  }
  0xa0   : > { %931 = vmatprep.subr.bf16.mxu1 %v1452_v23  ;;  %v1475_v54 = vld [vmem:[#allocation10 + $0x208] ss:$20 sps:$4 sm:$0xff]   ;;  %v1495_v56 = vld [vmem:[#allocation10 + $0x1c0] ss:$20 sps:$4 sm:$0xff]   ;;  %v1481_v58 = vld [vmem:[#allocation10 + $0x230] ss:$20 sps:$4 sm:$0xff]  }
  0xa1   : > { %891 = vmatpush1.bf16.msra.mxu0 %v1424_v16  ;;  %v1478_v55 = vld [vmem:[#allocation10 + $0x234] ss:$20 sps:$4 sm:$0xff]   ;;  %v1498_v57 = vld [vmem:[#allocation10 + $0x1ec] ss:$20 sps:$4 sm:$0xff]   ;;  %v1484_v59 = vld [vmem:[#allocation10 + $0x25c] ss:$20 sps:$4 sm:$0xff]  }
  0xa2   : > { %892 = vmatprep.subr.bf16.mxu0 %v1425_v17  ;;  %v1500_v60 = vld [vmem:[#allocation10 + $0x1e8] ss:$20 sps:$4 sm:$0xff]   ;;  %v1487_v62 = vld [vmem:[#allocation10 + $0x258] ss:$20 sps:$4 sm:$0xff]   ;;  %v1491_v63 = vld [vmem:[#allocation10 + $0x150] ss:$20 sps:$4 sm:$0xff]  }
  0xa3   : > { %932 = vmatpush1.bf16.msra.mxu1 %v1456_v26  ;;  %v1503_v61 = vld [vmem:[#allocation10 + $0x214] ss:$20 sps:$4 sm:$0xff]   ;;  %v1505_v0 = vld [vmem:[#allocation10 + $0x210] ss:$20 sps:$4 sm:$0xff]   ;;  %v1496_v4 = vld [vmem:[#allocation10 + $0x178] ss:$20 sps:$4 sm:$0xff]  }
  0xa4   : > { %933 = vmatprep.subr.bf16.mxu1 %v1458_v27  ;;  %v1508_v1 = vld [vmem:[#allocation10 + $0x23c] ss:$20 sps:$4 sm:$0xff]   ;;  %v339_v2 = vld [vmem:[%s2022_s23] sm:$0xf]  ;;  %v1513_v6 = vld [vmem:[#allocation10 + $0x264] ss:$20 sps:$4 sm:$0xff]  }
  0xa5   : > { %893 = vmatpush1.bf16.msra.mxu0 %v1427_v20  ;;  %v1492_v3 = vld [vmem:[#allocation10 + $0x10] ss:$20 sps:$4 sm:$0xff]   ;;  %v1510_v5 = vld [vmem:[#allocation10 + $0x238] ss:$20 sps:$4 sm:$0xff]   ;;  %v1501_v8 = vld [vmem:[#allocation10 + $0x1a0] ss:$20 sps:$4 sm:$0xff]  }
  0xa6   : > { %894 = vmatprep.subr.bf16.mxu0 %v1430_v21  ;;  %v1497_v7 = vld [vmem:[#allocation10 + $0x38] ss:$20 sps:$4 sm:$0xff]   ;;  %v1515_v9 = vld [vmem:[#allocation10 + $0x260] ss:$20 sps:$4 sm:$0xff]   ;;  %v1506_v11 = vld [vmem:[#allocation10 + $0x1c8] ss:$20 sps:$4 sm:$0xff]   ;;  %v441_v21 = vlaneseq }
  0xa7   : > { %934 = vmatpush1.bf16.msra.mxu1 %v1462_v30  ;;  %v1502_v10 = vld [vmem:[#allocation10 + $0x60] ss:$20 sps:$4 sm:$0xff]   ;;  %v1507_v12 = vld [vmem:[#allocation10 + $0x88] ss:$20 sps:$4 sm:$0xff]   ;;  %v1511_v13 = vld [vmem:[#allocation10 + $0x1f0] ss:$20 sps:$4 sm:$0xff]  }
  0xa8   : > { %935 = vmatprep.subr.bf16.mxu1 %v1464_v31  ;;  %v1512_v14 = vld [vmem:[#allocation10 + $0xb0] ss:$20 sps:$4 sm:$0xff]   ;;  %v1516_v15 = vld [vmem:[#allocation10 + $0x218] ss:$20 sps:$4 sm:$0xff]   ;;  %v1518_v17 = vld [vmem:[#allocation10 + $0x240] ss:$20 sps:$4 sm:$0xff]  }
  0xa9   : > { %895 = vmatpush1.bf16.msra.mxu0 %v1433_v24  ;;  %v1517_v16 = vld [vmem:[#allocation10 + $0xd8] ss:$20 sps:$4 sm:$0xff]   ;;  %v1519_v18 = vld [vmem:[#allocation10 + $0x100] ss:$20 sps:$4 sm:$0xff]   ;;  %v1520_v19 = vld [vmem:[#allocation10 + $0x268] ss:$20 sps:$4 sm:$0xff]  }
  0xaa   : > { %896 = vmatprep.subr.bf16.mxu0 %v1436_v25  ;;  %v1521_v20 = vld [vmem:[#allocation10 + $0x128] ss:$20 sps:$4 sm:$0xff]   ;;  %v442_v22 = vshrl.u32 %v441_v21, 7  ;;  %s1058_s10 = sshll.u32 %s1788_s11, 4  ;;  %s1288_s14 = sshll.u32 %s1852_s28, 7  ;;  %s1059_s10 = int_to_ptr.vmem [resolvable:$true] %s1058_s10 }
  0xab   : > { %936 = vmatpush1.bf16.msra.mxu1 %v1468_v34  ;;  %v439_v24 = vld [vmem:[%s2150_s4] sm:$0x1f]  ;;  %s1047_s29 = sshll.u32 %s2037_s13, 4  ;;  %s1789_s17 = smov [#allocation15]   ;;  %s2057_s29 = int_to_ptr.vmem [resolvable:$true] %s1047_s29 }
  0xac   : > { %937 = vmatprep.subr.bf16.mxu1 %v1470_v35  ;;  %v447_v23 = vsub.s32 1, %v442_v22  ;;  %v443_v25 = vsub.s32 0, %v442_v22  ;;  %v451_v36 = vsub.s32 2, %v442_v22  ;;  %s1069_s20 = sshll.u32 %s1789_s17, 4  ;;  %s2055_s23 = scalar_lea.hbm %s2151_s5, %s1288_s14  ;;  %s2060_s20 = int_to_ptr.vmem [resolvable:$true] %s1069_s20 }
  0xad   : > { %897 = vmatpush1.bf16.msra.mxu0 %v1439_v28  ;;  %s1650_s9 = scalar_lea.vmem %s1059_s10, 128  ;;  %p2172_p9 = scmp.eq.s32.totalorder %s1852_s28, 7 }
  0xae   : > { %898 = vmatprep.subr.bf16.mxu0 %v1442_v29  ;;  %v448_v26 = vrot.slane %v439_v24, %v447_v23  ;;  %v444_v27 = vrot.slane %v439_v24, %v443_v25  ;;  %p1651_p4 = scmp.ne.s32.totalorder %s1059_s10, %s1650_s9  ;;  %p1657_p10 = scmp.lt.s32.totalorder %s1059_s10, %s1059_s10 }
  0xaf   : > { %938 = vmatpush1.bf16.msra.mxu1 %v1474_v40  ;;  %p1658_p13 = scmp.lt.s32.totalorder %s1650_s9, %s1650_s9 }
  0xb0   : > { %939 = vmatprep.subr.bf16.mxu1 %v1476_v41  ;;  %v452_v41 = vrot.slane %v439_v24, %v451_v36  ;;  %p1652_p3 = pnand %p1651_p4, %p2172_p9 }
  0xb1   : > { %899 = vmatpush1.bf16.msra.mxu0 %v1445_v32  ;;  %p1659_p5 = por %p1658_p13, %p1657_p10 }
  0xb2   : > { %900 = vmatprep.subr.bf16.mxu0 %v1448_v33  ;;  %p1653_p7 = pneg %p1652_p3 }
  0xb3   : > { %940 = vmatpush1.bf16.msra.mxu1 %v1480_v44 }
  0xb4   : > { %941 = vmatprep.subr.bf16.mxu1 %v1482_v45  ;;  %p1660_p0 = pnand %p1659_p5, %p1653_p7 }
  0xb5   : > { %901 = vmatpush1.bf16.msra.mxu0 %v1451_v37 }
  0xb6   : > { %902 = vmatprep.subr.bf16.mxu0 %v1454_v39 }
  0xb7   : > { %942 = vmatpush1.bf16.msra.mxu1 %v1486_v48  ;;  %v455_v48 = vsub.s32 3, %v442_v22 }
  0xb8   : > { %943 = vmatprep.subr.bf16.mxu1 %v1488_v49  ;;  %v459_v49 = vsub.s32 4, %v442_v22 }
  0xb9   : > { %903 = vmatpush1.bf16.msra.mxu0 %v1457_v42 }
  0xba   : > { %904 = vmatprep.subr.bf16.mxu0 %v1460_v43 }
  0xbb   : > { %944 = vmatpush1.bf16.msra.mxu1 %v1490_v52  ;;  %v460_v52 = vrot.slane %v439_v24, %v459_v49 }
  0xbc   : > { %945 = vmatprep.subr.bf16.mxu1 %v1493_v53 }
  0xbd   : > { %905 = vmatpush1.bf16.msra.mxu0 %v1463_v46 }
  0xbe   : > { %906 = vmatprep.subr.bf16.mxu0 %v1466_v47 }
  0xbf   : > { %946 = vmatpush1.bf16.msra.mxu1 %v1495_v56 }
  0xc0   : > { %947 = vmatprep.subr.bf16.mxu1 %v1498_v57 }
  0xc1   : > { %907 = vmatpush1.bf16.msra.mxu0 %v1469_v50  ;;  %v456_v50 = vrot.slane %v439_v24, %v455_v48 }
  0xc2   : > { %908 = vmatprep.subr.bf16.mxu0 %v1472_v51 }
  0xc3   : > { %948 = vmatpush1.bf16.msra.mxu1 %v1500_v60 }
  0xc4   : > { %949 = vmatprep.subr.bf16.mxu1 %v1503_v61  ;;  %v341_v61 = vld [vmem:[#allocation3] sm:$0xff] }
  0xc5   : > { %909 = vmatpush1.bf16.msra.mxu0 %v1475_v54 }
  0xc6   : > { %910 = vmatprep.subr.bf16.mxu0 %v1478_v55 }
  0xc7   : > { %950 = vmatpush1.bf16.msra.mxu1 %v1505_v0 }
  0xc8   : > { %951 = vmatprep.subr.bf16.mxu1 %v1508_v1 }
  0xc9   : > { %911 = vmatpush1.bf16.msra.mxu0 %v1481_v58 }
  0xca   : > { %912 = vmatprep.subr.bf16.mxu0 %v1484_v59 }
  0xcb   : > { %952 = vmatpush1.bf16.msra.mxu1 %v1510_v5 }
  0xcc   : > { %953 = vmatprep.subr.bf16.mxu1 %v1513_v6 }
  0xcd   : > { %913 = vmatpush1.bf16.msra.mxu0 %v1487_v62 }
  0xce   : > { %1295 = vmatprep.subr.bf16.mxu0 %v1491_v63 }
  0xcf   : > { %954 = vmatpush1.bf16.msra.mxu1 %v1515_v9 }
  0xd0   : > { %915 = vmatmul.mubr.bf16.vlgmr.msra.gmra.mrb[0].mxu0 %v339_v2 }
  0xd1   : > { %1296 = vmatpush3.bf16.msra.mxu0 %v1492_v3  ;;  %996 = vmatprep.mubr.bf16.mxu0 %v2041_v38 }
  0xd2   : > { %1297 = vmatprep.subr.bf16.mxu0 %v1496_v4  ;;  %956 = vmatmul.mubr.bf16.vlgmr.msra.gmra.mrb[0].mxu1 %v339_v2 }
  0xd5   : > { %1298 = vmatpush3.bf16.msra.mxu0 %v1497_v7 }
  0xd6   : > { %1299 = vmatprep.subr.bf16.mxu0 %v1501_v8 }
  0xd9   : > { %1300 = vmatpush3.bf16.msra.mxu0 %v1502_v10 }
  0xda   : > { %1301 = vmatprep.subr.bf16.mxu0 %v1506_v11 }
  0xdd   : > { %1302 = vmatpush3.bf16.msra.mxu0 %v1507_v12 }
  0xde   : > { %1303 = vmatprep.subr.bf16.mxu0 %v1511_v13 }
  0xe1   : > { %1304 = vmatpush3.bf16.msra.mxu0 %v1512_v14 }
  0xe2   : > { %1305 = vmatprep.subr.bf16.mxu0 %v1516_v15 }
  0xe5   : > { %1306 = vmatpush3.bf16.msra.mxu0 %v1517_v16 }
  0xe6   : > { %1307 = vmatprep.subr.bf16.mxu0 %v1518_v17 }
  0xe9   : > { %1308 = vmatpush3.bf16.msra.mxu0 %v1519_v18 }
  0xea   : > { %1309 = vmatprep.subr.bf16.mxu0 %v1520_v19 }
  0xed   : > { %1310 = vmatpush3.bf16.msra.mxu0 %v1521_v20 }
  0xf0   : > { %997 = vmatmul.mubr.bf16.vlgmr.msra.gmra.mrb[4].mxu0 %v339_v2 }
 0x1a3   : > { %v916_v28 = vpop.f32.mrb[0].mxu0 }
 0x1a4   : > { %v918_v29 = vpop.f32.mrb[1].mxu0  ;;  %v917_v33 = vadd.f32 %v916_v28, %v444_v27 }
 0x1a5   : > { %v919_v30 = vadd.f32 %v918_v29, %v448_v26  ;;  %v920_v31 = vpop.f32.mrb[2].mxu0  ;;  %v957_v37 = vpop.f32.mrb[0].mxu1 }
 0x1a6   : > { %v921_v32 = vpop.f32.mrb[3].mxu0  ;;  %v1284_v35 = vmul.f32 -1.442695, %v917_v33  ;;  %v959_v38 = vpop.f32.mrb[1].mxu1  ;;  %v958_v42 = vadd.f32 %v957_v37, %v452_v41 }
 0x1a7   : > { %v1285_v34 = vmul.f32 -1.442695, %v919_v30  ;;  %v961_v39 = vpop.f32.mrb[2].mxu1  ;;  %v960_v58 = vadd.f32 %v959_v38, %v456_v50 }
 0x1a8   : > { %v962_v40 = vpop.f32.mrb[3].mxu1  ;;  %v1286_v44 = vmul.f32 -1.442695, %v958_v42 }
 0x1a9   : > { %1522 = vpow2.f32 %v1285_v34 }
 0x1aa   : > { %1524 = vpow2.f32 %v1284_v35 }
 0x1ab   : > { %1526 = vpow2.f32 %v1286_v44 }
 0x1b3   : > { %v1523_v43 = vpop.eup %1522 }
 0x1b4   : > { %v1525_v45 = vpop.eup %1524  ;;  %v1014_v46 = vadd.f32 1.0, %v1523_v43 }
 0x1b5   : > { %v1013_v47 = vadd.f32 1.0, %v1525_v45  ;;  %v1527_v56 = vpop.eup %1526 }
 0x1b6   : > { %1528 = vrcp.f32 %v1014_v46  ;;  %v1015_v62 = vadd.f32 1.0, %v1527_v56 }
 0x1b7   : > { %1530 = vrcp.f32 %v1013_v47 }
 0x1b8   : > { %1532 = vrcp.f32 %v1015_v62 }
 0x1c0   : > { %v1529_v60 = vpop.eup %1528 }
 0x1c1   : > { %v1531_v0 = vpop.eup %1530  ;;  %v1023_v1 = vmul.f32 %v1529_v60, %v341_v61 }
 0x1c2   : > { %v1533_v4 = vpop.eup %1532 }
 0x1c3   : > { %v1311_v51 = vpop.f32.mrb[4].mxu0 }
 0x1c4   : > { %v1312_v53 = vpop.f32.mrb[5].mxu0 }
 0x1c5   : > { %v1313_v54 = vadd.f32 %v1312_v53, %v1311_v51  ;;  %v1314_v55 = vpop.f32.mrb[6].mxu0 }
 0x1c6   : > { %v1315_v57 = vpop.f32.mrb[7].mxu0 }
 0x1c7   : > { %v999_v59 = vadd.f32 %v1313_v54, %v460_v52 }
 0x1c9   : > { %v1022_v63 = vmax.f32 %v960_v58, %v999_v59 }
 0x1cb   : > { %v1024_v2 = vmul.f32 %v1531_v0, %v1022_v63 }
 0x1cd   : > { %v1025_v3 = vadd.f32 %v1024_v2, %v1023_v1 }
 0x1cf   : > { %1534 = vtanh.f32 %v1025_v3  ;;  %1029 = vst [vmem:[#allocation3] sm:$0xff] %v1025_v3  ;;  %1032 = vst [vmem:[#allocation15] sm:$0xff] %v1025_v3 }
 0x1d9   : > { %v1535_v5 = vpop.eup %1534 }
 0x1da   : > { %v1027_v6 = vmul.f32 %v1535_v5, %v1533_v4 }
 0x1dc   : > { %1028 = vst [vmem:[#allocation2] sm:$0xff] %v1027_v6  ;;  %1031 = vst [vmem:[#allocation13] sm:$0xff] %v1027_v6 }
 0x1dd   : > { %1030 = vst [vmem:[%s2037_s13] sm:$0xff] %v1027_v6 }
 0x1de   : > { %1663 = shalt.err (!%p1660_p0)
}
 0x1df   : > { %s1664_s11 = scalar_lea.hbm %s2152_s6, 128  ;;  %p2173_p8 = pmov %p2172_p9 }
 0x1e0   : > { %p1665_p11 = scmp.ne.s32.totalorder %s2152_s6, %s1664_s11  ;;  %p1670_p1 = scmp.lt.u32.totalorder %s1664_s11, %s2152_s6 }
 0x1e2   : > { %p1666_p12 = pnand %p1665_p11, %p2173_p8 }
 0x1e4   : > { %p1667_p2 = pneg %p1666_p12 }
 0x1e6   : > { %p1672_p4 = pnand %p1670_p1, %p1667_p2 }
 0x1e8   : > { %1675 = shalt.err (!%p1672_p4)
}
 0x1e9   : > { %p2174_p9 = pmov %p2173_p8  ;;  %s1034_s30 = scalar_lea.sflag [#allocation6], %s2018_s15 }
 0x1ea   : > { %s1676_s22 = scalar_lea.vmem %s2057_s29, 128  ;;  %s1790_s11 = smov [#allocation12]  }
 0x1eb   : > { %1333 = dma.vmem_to_hbm [thread:$0]  (%p2174_p9), %s1059_s10, 128, %s2152_s6, [#allocation14]  }
 0x1ec   : > { %p1677_p3 = scmp.ne.s32.totalorder %s2057_s29, %s1676_s22  ;;  %s1680_s14 = sshll.u32 %s1790_s11, 4  ;;  %s1681_s14 = int_to_ptr.vmem [resolvable:$false] %s1680_s14 }
 0x1ed   : > { %s1682_s17 = scalar_lea.vmem %s1681_s14, 256  ;;  %p1683_p13 = scmp.lt.s32.totalorder %s2057_s29, %s1681_s14 }
 0x1ee   : > { %p1678_p7 = pnand %p1677_p3, %p1973_p6  ;;  %p1684_p5 = scmp.lt.s32.totalorder %s1682_s17, %s1676_s22 }
 0x1f0   : > { %p1679_p10 = pneg %p1678_p7  ;;  %p1685_p0 = por %p1684_p5, %p1683_p13 }
 0x1f2   : > { %p1686_p11 = pnand %p1685_p0, %p1679_p10 }
 0x1f4   : > { %1689 = shalt.err (!%p1686_p11)
}
 0x1f5   : > { %s1690_s15 = scalar_lea.hbm %s2055_s23, 128  ;;  %s1694_s16 = scalar_lea.hbm %s2151_s5, 1024 }
 0x1f6   : > { %p1691_p8 = scmp.ne.s32.totalorder %s2055_s23, %s1690_s15  ;;  %p1695_p1 = scmp.lt.u32.totalorder %s2055_s23, %s2151_s5 }
 0x1f7   : > { %p1696_p4 = scmp.lt.u32.totalorder %s1694_s16, %s1690_s15  ;;  %p1698_p3 = scmp.lt.u32.totalorder %s1690_s15, %s2055_s23 }
 0x1f8   : > { %p1692_p12 = pnand %p1691_p8, %p1973_p6 }
 0x1f9   : > { %p1697_p9 = por %p1696_p4, %p1695_p1 }
 0x1fa   : > { %p1693_p2 = pneg %p1692_p12 }
 0x1fb   : > { %p1699_p7 = por %p1698_p3, %p1697_p9 }
 0x1fd   : > { %p1700_p10 = pnand %p1699_p7, %p1693_p2 }
 0x1ff   : > { %1703 = shalt.err (!%p1700_p10)
}
 0x200   : > { %1331 = dma.vmem_to_hbm [thread:$0]  (%p1973_p6), %s2057_s29, 128, %s2055_s23, %s1034_s30  }
 0x201   : > { %s1704_s22 = scalar_lea.vmem %s2060_s20, 128  ;;  %p2175_p5 = scmp.eq.s32.totalorder %s1852_s28, 7 }
 0x202   : > { %p1705_p13 = scmp.ne.s32.totalorder %s2060_s20, %s1704_s22  ;;  %p1711_p8 = scmp.lt.s32.totalorder %s2060_s20, %s2060_s20 }
 0x203   : > { %p1712_p12 = scmp.lt.s32.totalorder %s1704_s22, %s1704_s22 }
 0x204   : > { %p1706_p0 = pnand %p1705_p13, %p2175_p5 }
 0x205   : > { %p1713_p1 = por %p1712_p12, %p1711_p8 }
 0x206   : > { %p1707_p11 = pneg %p1706_p0 }
 0x208   : > { %p1714_p2 = pnand %p1713_p1, %p1707_p11 }
 0x20a   : > { %1717 = shalt.err (!%p1714_p2)
}
 0x20b   : > { %s1718_s14 = scalar_lea.hbm %s2153_s7, 128  ;;  %p2176_p4 = pmov %p2175_p5 }
 0x20c   : > { %p1719_p6 = scmp.ne.s32.totalorder %s2153_s7, %s1718_s14  ;;  %p1724_p7 = scmp.lt.u32.totalorder %s1718_s14, %s2153_s7 }
 0x20e   : > { %p1720_p9 = pnand %p1719_p6, %p2176_p4 }
 0x210   : > { %p1721_p3 = pneg %p1720_p9 }
 0x212   : > { %p1726_p10 = pnand %p1724_p7, %p1721_p3 }
 0x214   : > { %1729 = shalt.err (!%p1726_p10)
}
 0x215   : > { %p2177_p13 = pmov %p2176_p4  ;;  %p2178_p5 = pmov %p2176_p4 }
 0x217   : > { %1335 = dma.vmem_to_hbm [thread:$0]  (%p2177_p13), %s2060_s20, 128, %s2153_s7, [#allocation14]  }
 0x218   : > { %1759 = dma.done.wait (%p2178_p5), [#allocation14], 256   ;;  %p2179_p0 = pmov %p2176_p4 }
 0x21a   : > { %1761 = vsyncadd (%p2179_p0), [#allocation14], 4294967040 }
 0x21b PF: > { %p1370_p11 = scmp.ge.s32.totalorder %s1780_s27, 2  ;;  %s1089_s13 = sand.u32 1, %s1768_s24  }
 0x21c   : > { %p2180_p8 = scmp.ne.s32.totalorder %s2158_s8, 0  ;;  %s1090_s16 = scalar_lea.sflag [#allocation6], %s1089_s13 }
 0x21e   : > { %p1356_p12 = pnand %p1370_p11, %p2180_p8 }
 0x220   : > { %1763 = dma.done.wait (!%p1356_p12), %s1090_s16, 128  }
 0x221   : > { %1765 = vsyncadd (!%p1356_p12), %s1090_s16, 4294967168  ;;  %p24_p1 = scmp.ge.s32.totalorder %s1959_s12, 10   ;;  %s2181_s24 = smov %s1772_s25 }
 0x222   : > { %s2182_s25 = smov %s1776_s26  ;;  %s2183_s26 = smov %s1969_s18 }
 0x223   : > { %s2184_s27 = smov %s1959_s12  ;;  %26 = sbr.rel (!%p24_p1) target bundleno = 8 (0x8), region = 117 }
 0x22a   :  { %1095 = vsyncpa [#allocation5], 1 }
 0x22b   :  { %1097 = vsyncpa [#allocation5 + $0x1], 1 }
 0x22c   :  { %1098 = vsyncpa [#allocation8], 1 }
 0x22d   :  { %1099 = vsyncpa [#allocation11], 1 }
 0x22e   :  { %1100 = vsyncpa [#allocation6], 1 }
 0x22f   :  { %1102 = vsyncpa [#allocation6 + $0x1], 1 }
 0x230   :  { %1103 = vsyncpa [#allocation14], 1 }

</bundles_post_ra>
